<compile_context>
chip_gen: v6e
topology: v6e:2x2x1
jax: 0.10.0
libtpu: 0.0.40
codegen_flags: <defaults>
</compile_context>

<pallas_src>
import functools

import jax
import jax.numpy as jnp
import numpy as np
from jax.experimental import pallas as pl
from jax.experimental.pallas import tpu as pltpu


def _round_up(x, m):
    return (x + m - 1) // m * m


def _shortwave_kernel(halo_ref, x_ref, w_ref, b_ref, o_ref, win_ref, *,
                      halo_p, npk, n_taps, head_rows):
    """One row tile of the composed causal conv.

    halo_ref: (1, halo_p, kC)  last (n_taps-1) timesteps before this tile
                               (zeros where that reaches before t=0)
    x_ref   : (tr_p, kC)       current packed-row tile
    w_ref   : (n_taps, kC, kH) block-diagonal packed taps
    b_ref   : (1+head_rows,kH) row 0: full bias; rows 1..: tile-0 boundary fix
    o_ref   : (tr_p, kH)
    win_ref : (halo_p+tr_p,kC) VMEM scratch window (halo | current tile)
    """
    tr_p = x_ref.shape[0]

    # Tap d=0 straight from the current tile (no window round-trip).
    acc = jnp.dot(x_ref[...], w_ref[0], preferred_element_type=jnp.float32)

    # Contiguous window for the shifted taps d=1..n_taps-1.
    win_ref[0:halo_p, :] = halo_ref[0]
    win_ref[halo_p:halo_p + tr_p, :] = x_ref[...]
    for d in range(1, n_taps):
        start = halo_p - d * npk              # static, >= 0
        acc = acc + jnp.dot(win_ref[start:start + tr_p, :], w_ref[d],
                            preferred_element_type=jnp.float32)

    acc = acc + b_ref[0:1, :]                 # steady-state bias (broadcast)
    o_ref[...] = acc.astype(o_ref.dtype)

    # First min(n_taps-1, L) timesteps live in tile 0: drop the bias of taps
    # that would reach before t=0 (matches per-layer zero padding exactly).
    @pl.when(pl.program_id(0) == 0)
    def _():
        o_ref[0:head_rows, :] = (o_ref[0:head_rows, :]
                                 - b_ref[1:1 + head_rows, :]).astype(o_ref.dtype)


def _compose_taps(layer_params, input_size, hidden_size):
    """Compose the stacked causal k=2 convs into one causal multi-tap conv.

    Returns (T, c): T[d] (input_size, H), c[d] (H,), such that
        y[t] = sum_{d : t-d >= 0} ( x[t-d] @ T[d] + c[d] )
    which is exactly the layer-by-layer result including the zero-padding
    boundary (biases are folded through an augmented ones channel that is also
    zero for t < 0).
    """
    n_in = input_size + 1
    poly = [jnp.eye(n_in, dtype=jnp.float32)]
    for (w, b) in layer_params:
        cout, cin, _ = w.shape
        a_aug = jnp.zeros((cout + 1, cin + 1), jnp.float32)
        a_aug = a_aug.at[:cout, :cin].set(w[:, :, 1])    # tap on x[t]
        a_aug = a_aug.at[:cout, cin].set(b)              # bias via ones channel
        a_aug = a_aug.at[cout, cin].set(1.0)             # ones channel pass-through
        b_aug = jnp.zeros((cout + 1, cin + 1), jnp.float32)
        b_aug = b_aug.at[:cout, :cin].set(w[:, :, 0])    # tap on x[t-1]
        new = [a_aug @ p for p in poly] + [jnp.zeros((cout + 1, n_in), jnp.float32)]
        for d, p in enumerate(poly):
            new[d + 1] = new[d + 1] + b_aug @ p
        poly = new
    taps = [p[:hidden_size, :] for p in poly]            # (H, Cin+1)
    T = [t[:, :input_size].T for t in taps]              # (Cin, H)
    c = [t[:, input_size] for t in taps]                 # (H,)
    return T, c


@functools.partial(jax.jit, static_argnames=("target_rows",))
def shortwave_pallas(x, layer_params, *, target_rows=4096):
    """x: (L, N, input_size); layer_params: list of (w (H, Cprev, 2), b (H,)).

    Returns (L, N, H), matching torch ShortWave.forward on (seq, batch, chan).
    """
    L, N, Cin = x.shape
    H = layer_params[-1][0].shape[0]
    n_taps = len(layer_params) + 1
    dt = x.dtype

    # ---- host-side (trace-time) weight composition ---------------------------
    T, c = _compose_taps(layer_params, Cin, H)

    # Lane packing: fold k = 128/H consecutive rows into the lane dim so output
    # stores are 128-lane dense with no HBM padding bytes.
    k = 128 // H if (H < 128 and 128 % H == 0) else 1
    Npad = _round_up(N, k)
    if Npad != N:                          # tiny batch pad only when N % k != 0
        x = jnp.pad(x, ((0, 0), (0, Npad - N), (0, 0)))
    npk = Npad // k                        # one timestep, in packed rows
    kC, kH = k * Cin, k * H
    PR = L * npk                           # total packed rows
    x2 = x.reshape(PR, kC)                 # free, contiguous reshape

    # Block-diagonal packed taps: (n_taps, kC, kH), in the input dtype.
    eye_k = jnp.eye(k, dtype=jnp.float32)
    w_bd = jnp.stack([jnp.kron(eye_k, t) for t in T]).astype(dt)

    # Bias: row 0 = full bias; rows 1.. = per-packed-row boundary correction.
    n_head_t = min(n_taps - 1, L)
    head_rows = n_head_t * npk
    b_full = jnp.tile(sum(c), k)[None, :]
    fixes = [jnp.tile(sum(c[d] for d in range(t + 1, n_taps)), k)
             for t in range(n_head_t)]
    head_fix = jnp.repeat(jnp.stack(fixes, axis=0), npk, axis=0)
    bias_pack = jnp.concatenate([b_full, head_fix], axis=0).astype(jnp.float32)

    # ---- row tiling -----------------------------------------------------------
    halo_p = (n_taps - 1) * npk            # causal halo, in packed rows
    tgt = max(target_rows // k, 8)
    tr_p = min(PR, _round_up(max(min(tgt, PR), head_rows), 8))
    n_tiles = (PR + tr_p - 1) // tr_p      # ragged last tile -> Pallas edge mask

    # Tiny per-tile halo gather (zeros where the window reaches before t=0);
    # makes every tile independent -> "parallel" grid.
    ridx = (jnp.arange(n_tiles)[:, None] * tr_p - halo_p
            + jnp.arange(halo_p)[None, :])
    halo = jnp.where((ridx >= 0)[:, :, None],
                     jnp.take(x2, jnp.clip(ridx, 0, PR - 1), axis=0),
                     jnp.zeros((), dt))

    kernel = functools.partial(_shortwave_kernel, halo_p=halo_p, npk=npk,
                               n_taps=n_taps, head_rows=head_rows)
    out = pl.pallas_call(
        kernel,
        out_shape=jax.ShapeDtypeStruct((PR, kH), dt),
        grid=(n_tiles,),
        in_specs=[
            pl.BlockSpec((1, halo_p, kC), lambda i: (i, 0, 0)),    # halo (tiny)
            pl.BlockSpec((tr_p, kC), lambda i: (i, 0)),            # row tile
            pl.BlockSpec((n_taps, kC, kH), lambda i: (0, 0, 0)),   # taps (resident)
            pl.BlockSpec((1 + head_rows, kH), lambda i: (0, 0)),   # bias (resident)
        ],
        out_specs=pl.BlockSpec((tr_p, kH), lambda i: (i, 0)),
        scratch_shapes=[pltpu.VMEM((halo_p + tr_p, kC), dt)],
        compiler_params=pltpu.CompilerParams(
            dimension_semantics=("parallel",),       # tiles are independent
            vmem_limit_bytes=32 * 1024 * 1024,       # safe on v5e/v6e/v7x
        ),
    )(halo, x2, w_bd, bias_pack)

    # Undo lane packing / batch padding (free reshape + cheap slice).
    return out.reshape(L, Npad, H)[:, :N, :]


def shortwave_ref(x, layer_params):
    """Pure-JAX layer-by-layer reference matching PyTorch ShortWave.forward."""
    h = x
    for (w, b) in layer_params:
        prev = jnp.concatenate([jnp.zeros_like(h[:1]), h[:-1]], axis=0)
        h = (jnp.einsum('lnc,oc->lno', h, w[:, :, 1])
             + jnp.einsum('lnc,oc->lno', prev, w[:, :, 0])
             + b)
    return h


def make_params(key, input_size, hidden_size, layers=3):
    """Deterministic synthetic params; PyTorch Conv1d weight shape is (out, in, k=2)."""
    params = []
    prev = input_size
    for _ in range(layers):
        key, kw, kb = jax.random.split(key, 3)
        bound = 1.0 / np.sqrt(prev * 2)
        w = jax.random.uniform(kw, (hidden_size, prev, 2), jnp.float32, -bound, bound)
        b = jax.random.uniform(kb, (hidden_size,), jnp.float32, -bound, bound)
        params.append((w, b))
        prev = hidden_size
    return params


if __name__ == "__main__":
    key = jax.random.PRNGKey(0)

    # Config 1: H | 128 -> lane-packed output path (k=4).  Small target_rows
    # forces many tiles, a ragged last tile, cross-tile halo and the tile-0
    # boundary-bias fix; N=2 exercises the N % k != 0 batch-pad path.
    L, N, input_size, hidden_size = 62, 2, 4, 32
    key, kx, kp = jax.random.split(key, 3)
    x = jax.random.normal(kx, (L, N, input_size), jnp.float32)
    params = make_params(kp, input_size, hidden_size, layers=3)
    out = jax.block_until_ready(shortwave_pallas(x, params, target_rows=32))
    ref = jax.block_until_ready(shortwave_ref(x, params))
    assert out.shape == (L, N, hidden_size)
    np.testing.assert_allclose(np.asarray(out), np.asarray(ref),
                               rtol=2e-4, atol=2e-5)

    # Config 2: H does not divide 128 -> unpadded (rows, H) output path (k=1),
    # unaligned per-timestep shifts, multiple tiles + ragged edge.
    L, N, input_size, hidden_size = 9, 3, 3, 48
    key, kx, kp = jax.random.split(key, 3)
    x = jax.random.normal(kx, (L, N, input_size), jnp.float32)
    params = make_params(kp, input_size, hidden_size, layers=3)
    out = jax.block_until_ready(shortwave_pallas(x, params, target_rows=8))
    ref = jax.block_until_ready(shortwave_ref(x, params))
    assert out.shape == (L, N, hidden_size)
    np.testing.assert_allclose(np.asarray(out), np.asarray(ref),
                               rtol=2e-4, atol=2e-5)

    print("KERNEL_OK")
</pallas_src>

<mosaic_0001>
module attributes {stable_mosaic.version = 11 : i64} {
  func.func @_shortwave_kernel(%arg0: i32, %arg1: memref<1x3x16xf32, #tpu.memory_space<vmem>>, %arg2: memref<8x16xf32, #tpu.memory_space<vmem>>, %arg3: memref<4x16x128xf32, #tpu.memory_space<vmem>>, %arg4: memref<4x128xf32, #tpu.memory_space<vmem>>, %arg5: memref<8x128xf32, #tpu.memory_space<vmem>>, %arg6: memref<11x16xf32, #tpu.memory_space<vmem>>) attributes {dimension_semantics = [#tpu.dimension_semantics<parallel>], iteration_bounds = array<i64: 8>, scalar_prefetch = 0 : i64, scratch_operands = 1 : i64, tpu.core_type = #tpu.core_type<tc>, window_params = [{transform_indices = @transform_0, window_bounds = array<i64: 1, 3, 16>}, {transform_indices = @transform_1, window_bounds = array<i64: 8, 16>}, {pipeline_mode = #tpu.pipeline_mode<synchronous>, transform_indices = @transform_2, window_bounds = array<i64: 4, 16, 128>}, {pipeline_mode = #tpu.pipeline_mode<synchronous>, transform_indices = @transform_3, window_bounds = array<i64: 4, 128>}, {transform_indices = @transform_4, window_bounds = array<i64: 8, 128>}]} {
    %c0 = arith.constant 0 : index
    %c0_0 = arith.constant 0 : index
    %0 = vector.load %arg2[%c0, %c0_0] : memref<8x16xf32, #tpu.memory_space<vmem>>, vector<8x16xf32>
    %c0_1 = arith.constant 0 : index
    %c0_2 = arith.constant 0 : index
    %c0_3 = arith.constant 0 : index
    %1 = vector.load %arg3[%c0_1, %c0_2, %c0_3] : memref<4x16x128xf32, #tpu.memory_space<vmem>>, vector<1x16x128xf32>
    %2 = vector.shape_cast %1 : vector<1x16x128xf32> to vector<16x128xf32>
    %cst = arith.constant dense<0.000000e+00> : vector<8x128xf32>
    %3 = tpu.matmul %0, %2, %cst {dimension_numbers = #tpu.dot_dimension_numbers<[1], [0], [0], [1], [0, 0, 1, 1], [], []>} : vector<8x16xf32>, vector<16x128xf32>, vector<8x128xf32> -> vector<8x128xf32>
    %c0_4 = arith.constant 0 : index
    %c0_5 = arith.constant 0 : index
    %c0_6 = arith.constant 0 : index
    %4 = vector.load %arg1[%c0_4, %c0_5, %c0_6] : memref<1x3x16xf32, #tpu.memory_space<vmem>>, vector<1x3x16xf32>
    %5 = vector.shape_cast %4 : vector<1x3x16xf32> to vector<3x16xf32>
    %c0_7 = arith.constant 0 : index
    %c0_8 = arith.constant 0 : index
    %6 = vector.load %arg6[%c0_7, %c0_8] : memref<11x16xf32, #tpu.memory_space<vmem>>, vector<3x16xf32>
    tpu.vector_store %arg6[%c0_7, %c0_8], %5 {strides = array<i32>} : memref<11x16xf32, #tpu.memory_space<vmem>>, vector<3x16xf32>,
    %c0_9 = arith.constant 0 : index
    %c0_10 = arith.constant 0 : index
    %7 = vector.load %arg2[%c0_9, %c0_10] : memref<8x16xf32, #tpu.memory_space<vmem>>, vector<8x16xf32>
    %c3 = arith.constant 3 : index
    %c0_11 = arith.constant 0 : index
    %8 = vector.load %arg6[%c3, %c0_11] : memref<11x16xf32, #tpu.memory_space<vmem>>, vector<8x16xf32>
    tpu.vector_store %arg6[%c3, %c0_11], %7 {strides = array<i32>} : memref<11x16xf32, #tpu.memory_space<vmem>>, vector<8x16xf32>,
    %c2 = arith.constant 2 : index
    %c0_12 = arith.constant 0 : index
    %9 = vector.load %arg6[%c2, %c0_12] : memref<11x16xf32, #tpu.memory_space<vmem>>, vector<8x16xf32>
    %c1 = arith.constant 1 : index
    %c0_13 = arith.constant 0 : index
    %c0_14 = arith.constant 0 : index
    %10 = vector.load %arg3[%c1, %c0_13, %c0_14] : memref<4x16x128xf32, #tpu.memory_space<vmem>>, vector<1x16x128xf32>
    %11 = vector.shape_cast %10 : vector<1x16x128xf32> to vector<16x128xf32>
    %cst_15 = arith.constant dense<0.000000e+00> : vector<8x128xf32>
    %12 = tpu.matmul %9, %11, %cst_15 {dimension_numbers = #tpu.dot_dimension_numbers<[1], [0], [0], [1], [0, 0, 1, 1], [], []>} : vector<8x16xf32>, vector<16x128xf32>, vector<8x128xf32> -> vector<8x128xf32>
    %13 = arith.addf %3, %12 : vector<8x128xf32>
    %c1_16 = arith.constant 1 : index
    %c0_17 = arith.constant 0 : index
    %14 = vector.load %arg6[%c1_16, %c0_17] : memref<11x16xf32, #tpu.memory_space<vmem>>, vector<8x16xf32>
    %c2_18 = arith.constant 2 : index
    %c0_19 = arith.constant 0 : index
    %c0_20 = arith.constant 0 : index
    %15 = vector.load %arg3[%c2_18, %c0_19, %c0_20] : memref<4x16x128xf32, #tpu.memory_space<vmem>>, vector<1x16x128xf32>
    %16 = vector.shape_cast %15 : vector<1x16x128xf32> to vector<16x128xf32>
    %cst_21 = arith.constant dense<0.000000e+00> : vector<8x128xf32>
    %17 = tpu.matmul %14, %16, %cst_21 {dimension_numbers = #tpu.dot_dimension_numbers<[1], [0], [0], [1], [0, 0, 1, 1], [], []>} : vector<8x16xf32>, vector<16x128xf32>, vector<8x128xf32> -> vector<8x128xf32>
    %18 = arith.addf %13, %17 : vector<8x128xf32>
    %c0_22 = arith.constant 0 : index
    %c0_23 = arith.constant 0 : index
    %19 = vector.load %arg6[%c0_22, %c0_23] : memref<11x16xf32, #tpu.memory_space<vmem>>, vector<8x16xf32>
    %c3_24 = arith.constant 3 : index
    %c0_25 = arith.constant 0 : index
    %c0_26 = arith.constant 0 : index
    %20 = vector.load %arg3[%c3_24, %c0_25, %c0_26] : memref<4x16x128xf32, #tpu.memory_space<vmem>>, vector<1x16x128xf32>
    %21 = vector.shape_cast %20 : vector<1x16x128xf32> to vector<16x128xf32>
    %cst_27 = arith.constant dense<0.000000e+00> : vector<8x128xf32>
    %22 = tpu.matmul %19, %21, %cst_27 {dimension_numbers = #tpu.dot_dimension_numbers<[1], [0], [0], [1], [0, 0, 1, 1], [], []>} : vector<8x16xf32>, vector<16x128xf32>, vector<8x128xf32> -> vector<8x128xf32>
    %23 = arith.addf %18, %22 : vector<8x128xf32>
    %c0_28 = arith.constant 0 : index
    %c0_29 = arith.constant 0 : index
    %24 = vector.load %arg4[%c0_28, %c0_29] : memref<4x128xf32, #tpu.memory_space<vmem>>, vector<1x128xf32>
    %25 = vector.broadcast %24 : vector<1x128xf32> to vector<8x128xf32>
    %26 = arith.addf %23, %25 : vector<8x128xf32>
    %c0_30 = arith.constant 0 : index
    %c0_31 = arith.constant 0 : index
    %27 = vector.load %arg5[%c0_30, %c0_31] : memref<8x128xf32, #tpu.memory_space<vmem>>, vector<8x128xf32>
    tpu.vector_store %arg5[%c0_30, %c0_31], %26 {strides = array<i32>} : memref<8x128xf32, #tpu.memory_space<vmem>>, vector<8x128xf32>,
    %c0_i32 = arith.constant 0 : i32
    %28 = arith.cmpi eq, %arg0, %c0_i32 : i32
    %29 = arith.extui %28 : i1 to i32
    %c0_i32_32 = arith.constant 0 : i32
    %30 = arith.cmpi ne, %29, %c0_i32_32 : i32
    scf.if %30 {
      %c0_33 = arith.constant 0 : index
      %c0_34 = arith.constant 0 : index
      %31 = vector.load %arg5[%c0_33, %c0_34] : memref<8x128xf32, #tpu.memory_space<vmem>>, vector<3x128xf32>
      %c1_35 = arith.constant 1 : index
      %c0_36 = arith.constant 0 : index
      %32 = vector.load %arg4[%c1_35, %c0_36] : memref<4x128xf32, #tpu.memory_space<vmem>>, vector<3x128xf32>
      %33 = arith.subf %31, %32 : vector<3x128xf32>
      %c0_37 = arith.constant 0 : index
      %c0_38 = arith.constant 0 : index
      %34 = vector.load %arg5[%c0_37, %c0_38] : memref<8x128xf32, #tpu.memory_space<vmem>>, vector<3x128xf32>
      tpu.vector_store %arg5[%c0_37, %c0_38], %33 {strides = array<i32>} : memref<8x128xf32, #tpu.memory_space<vmem>>, vector<3x128xf32>,
    } else {
    }
    return
  }
  func.func @transform_0(%arg0: i32) -> (i32, i32, i32) {
    %c0_i32 = arith.constant 0 : i32
    %c0_i32_0 = arith.constant 0 : i32
    %c0_i32_1 = arith.constant 0 : i32
    return %arg0, %c0_i32, %c0_i32_0 : i32, i32, i32
  }
  func.func @transform_1(%arg0: i32) -> (i32, i32) {
    %c0_i32 = arith.constant 0 : i32
    %c0_i32_0 = arith.constant 0 : i32
    return %arg0, %c0_i32 : i32, i32
  }
  func.func @transform_2(%arg0: i32) -> (i32, i32, i32) {
    %c0_i32 = arith.constant 0 : i32
    %c0_i32_0 = arith.constant 0 : i32
    %c0_i32_1 = arith.constant 0 : i32
    %c0_i32_2 = arith.constant 0 : i32
    return %c0_i32, %c0_i32_0, %c0_i32_1 : i32, i32, i32
  }
  func.func @transform_3(%arg0: i32) -> (i32, i32) {
    %c0_i32 = arith.constant 0 : i32
    %c0_i32_0 = arith.constant 0 : i32
    %c0_i32_1 = arith.constant 0 : i32
    return %c0_i32, %c0_i32_0 : i32, i32
  }
  func.func @transform_4(%arg0: i32) -> (i32, i32) {
    %c0_i32 = arith.constant 0 : i32
    %c0_i32_0 = arith.constant 0 : i32
    return %arg0, %c0_i32 : i32, i32
  }
}

</mosaic_0001>

<bundles_post_ra>
// kernel: tile.22
= control target key start
LH: loop header
LB: loop body
LE: loop exit
PB: predicated region body
PF: predicated region fallthrough
CT: control target
= control target key end

     0   :  { %s22_s0 = inlined_call_operand.vmem [shape: f32[32], index: 0, kind: input, shape index: {}]   ;;  %s23_s1 = inlined_call_operand.vmem [shape: f32[4,32], index: 1, kind: output, shape index: {}]  }
   0x1   :  { %v4_v0 = vld [vmem:[%s22_s0] ss:$0 sm:$0xff] }
   0x2   :  { %5 = vst [vmem:[%s23_s1] sm:$0xf] %v4_v0 }

// kernel: tile.23
= control target key start
LH: loop header
LB: loop body
LE: loop exit
PB: predicated region body
PF: predicated region fallthrough
CT: control target
= control target key end

     0   :  { %vm8_vm0 = vcmask 261120   ;;  %s40_s8 = smov 32   ;;  %s41_s9 = smov 64   ;;  %vm14_vm1 = vcmask 1048320   ;;  %vm20_vm2 = vcmask 785920   ;;  %vm26_vm3 = vcmask 523520   ;;  %s58_s0 = inlined_call_operand.vmem [shape: f32[4,32], index: 0, kind: input, shape index: {}]   ;;  %s59_s1 = inlined_call_operand.vmem [shape: f32[1,128], index: 1, kind: output, shape index: {}]  }
   0x1   :  { %v5_v0 = vld [vmem:[%s58_s0] sm:$0xf]  ;;  %s39_s0 = smov 96  }
   0x2   :  { %6 = vst [vmem:[#allocation1] sm:$0xf] %v5_v0 }
   0x9   :  { %v11_v1 = vld [vmem:[#allocation1 + $0x3] sm:$0x1]   ;;  %v23_v2 = vld [vmem:[#allocation1 + $0x1] sm:$0x1]   ;;  %v7_v3 = vld [vmem:[#allocation1] sm:$0x1]  }
   0xa   :  { %12 = vrot.lane.b32.xlu0 %v11_v1, %s39_s0  ;;  %24 = vrot.lane.b32.xlu1 %v23_v2, %s40_s8  ;;  %v17_v4 = vld [vmem:[#allocation1 + $0x2] sm:$0x1]   ;;  %9 = vst.msk [vmem:[#allocation0] sm:$0x1] %vm8_vm0, %v7_v3  }
   0xe   :  { %18 = vrot.lane.b32.xlu0 %v17_v4, %s41_s9 }
  0x7c   :  { %v13_v5 = vpop.permute.xlu0 %12   ;;  %v25_v6 = vpop.permute.xlu1 %24  }
  0x7d   :  { %15 = vst.msk [vmem:[#allocation0] sm:$0x1] %vm14_vm1, %v13_v5  }
  0x80   :  { %v19_v7 = vpop.permute.xlu0 %18  }
  0x81   :  { %21 = vst.msk [vmem:[#allocation0] sm:$0x1] %vm20_vm2, %v19_v7  }
  0x82   :  { %27 = vst.msk [vmem:[#allocation0] sm:$0x1] %vm26_vm3, %v25_v6  }
  0x89   :  { %v32_v8 = vld [vmem:[#allocation0] sm:$0x1] }
  0x8a   :  { %35 = vst [vmem:[%s59_s1] sm:$0x1] %v32_v8 }

// kernel: shortwave_pallas.1
= control target key start
LH: loop header
LB: loop body
LE: loop exit
PB: predicated region body
PF: predicated region fallthrough
CT: control target
= control target key end

     0   :  { %s712_s15 = smov 0   ;;  %s784_s0 = inlined_call_operand.vmem [shape: f32[8,3,16], index: 0, kind: input, shape index: {}]   ;;  %s785_s1 = inlined_call_operand.vmem [shape: f32[62,16], index: 1, kind: input, shape index: {}]   ;;  %s786_s2 = inlined_call_operand.vmem [shape: f32[4,16,128], index: 2, kind: input, shape index: {}]   ;;  %s787_s3 = inlined_call_operand.vmem [shape: f32[4,128], index: 3, kind: input, shape index: {}]   ;;  %s788_s4 = inlined_call_operand.vmem [shape: f32[62,128], index: 4, kind: output, shape index: {}]  }
   0x1 LB: > { %s718_s16 = sadd.s32 4294967295, %s683_s15   ;;  %p609_p0 = scmp.ge.s32.totalorder %s683_s15, 1  ;;  %s683_s15 = sphi %s712_s15, %s14_s15  }
   0x2   : > { %p170_p1 = scmp.lt.s32.totalorder %s683_s15, 9 }
   0x4   : > { %p171_p2 = pnand %p609_p0, %p170_p1 }
   0x5   : > { %p198_p3 = scmp.lt.s32.totalorder (!%p171_p2), %s718_s16, 7  ;;  %p624_p4 = scmp.ne.s32.totalorder (!%p171_p2), %s718_s16, 0 }
   0x6   : > { %174 = sbr.rel (%p171_p2) target bundleno = 239 (0xef), region = 36 }
   0xb   : > { %v614_v0 = vld [vmem:[%s786_s2 + $0x18] sm:$0xff]  ;;  %v212_v1 = vld [vmem:[%s786_s2 + $0x8] sm:$0xff]  ;;  %v685_v2 = vmov 0.0   ;;  %v613_v3 = vld [vmem:[%s786_s2 + $0x10] sm:$0xff]  ;;  %s736_s25 = scalar_select %p198_p3, %s718_s16, 7  ;;  %vm686_vm0 = vmmov 0  }
   0xc   : > { %639 = vmatprep.subr.mxu0 %v685_v2  ;;  %646 = vmatprep.subr.mxu1 %v685_v2  ;;  %v211_v4 = vld [vmem:[%s786_s2] sm:$0xff]  ;;  %vm214_vm1 = vcmask 124928   ;;  %vm217_vm2 = vcmask 130048   ;;  %v621_v5 = vld [vmem:[%s786_s2 + $0x38] sm:$0xff]  ;;  %v620_v8 = vld [vmem:[%s786_s2 + $0x30] sm:$0xff] }
   0xd   : > { %640 = vmatpush3.msra.mxu0 %v614_v0  ;;  %647 = vmatpush3.msra.mxu1 %v212_v1  ;;  %s610_s26 = sshll.u32 %s736_s25, 2  ;;  %s611_s27 = sshll.u32 %s736_s25, 3  ;;  %v618_v9 = vld [vmem:[%s786_s2 + $0x28] sm:$0xff]  ;;  %v617_v12 = vld [vmem:[%s786_s2 + $0x20] sm:$0xff] }
   0xe   : > { %641 = vmatprep.subr.mxu0 %v685_v2  ;;  %648 = vmatprep.subr.mxu1 %v685_v2  ;;  %s201_s30 = scalar_lea.vmem %s784_s0, %s610_s26  ;;  %s205_s7 = scalar_lea.vmem %s785_s1, %s611_s27  ;;  %v623_v23 = vld [vmem:[%s787_s3] ss:$0 sm:$0xff] }
   0xf   : > { %642 = vmatpush3.msra.mxu0 %v613_v3  ;;  %643 = vmatprep.mubr.msk.f32.mxu0 %vm686_vm0, %v685_v2  ;;  %v213_v6 = vld [vmem:[%s201_s30] sm:$0x7]  ;;  %s209_s22 = scalar_lea.vmem %s788_s4, %s611_s27 }
  0x10   : > { %649 = vmatpush3.msra.mxu1 %v211_v4  ;;  %650 = vmatprep.mubr.msk.f32.mxu1 %vm686_vm0, %v685_v2  ;;  %v216_v7 = vld [vmem:[%s205_s7] sm:$0xff]  ;;  %215 = vst.msk [vmem:[#allocation2] sm:$0x7] %vm214_vm1, %v213_v6 }
  0x11   : > { %653 = vmatprep.subr.mxu0 %v685_v2  ;;  %660 = vmatprep.subr.mxu1 %v685_v2  ;;  %218 = vst.msk [vmem:[#allocation2 + $0x3] sm:$0xff] %vm217_vm2, %v216_v7 }
  0x12   : > { %651 = vmatmul.mubr.msk.f32.vlgmr.msra.gmra.mxu1 %vm217_vm2, %v216_v7 }
  0x13   : > { %661 = vmatpush3.msra.mxu1 %v621_v5  ;;  %664 = vmatprep.mubr.msk.f32.mxu1 %vm686_vm0, %v685_v2 }
  0x14   : > { %662 = vmatprep.subr.mxu1 %v685_v2 }
  0x15   : > { %663 = vmatpush3.msra.mxu1 %v620_v8 }
  0x18   : > { %v219_v10 = vld [vmem:[#allocation2 + $0x2] sm:$0xff] }
  0x19   : > { %v447_v11 = vld [vmem:[#allocation2] sm:$0xff]  ;;  %644 = vmatmul.mubr.msk.f32.vlgmr.msra.gmra.mxu0 %vm217_vm2, %v219_v10 }
  0x1a   : > { %665 = vmatmul.mubr.msk.f32.vlgmr.msra.gmra.mxu1 %vm217_vm2, %v447_v11  ;;  %654 = vmatpush3.msra.mxu0 %v618_v9  ;;  %v369_v13 = vld [vmem:[#allocation2 + $0x1] sm:$0xff] }
  0x1b   : > { %657 = vmatprep.mubr.msk.f32.mxu0 %vm686_vm0, %v685_v2  ;;  %655 = vmatprep.subr.mxu0 %v685_v2 }
  0x1c   : > { %656 = vmatpush3.msra.mxu0 %v617_v12 }
  0x1d   : > { %658 = vmatmul.mubr.msk.f32.vlgmr.msra.gmra.mxu0 %vm217_vm2, %v369_v13 }
  0xd2   : > { %v365_v14 = vpop.f32.mrf.mxu1 }
  0xd4   : > { %v652_v15 = vpop.f32.mrf.mxu1 }
  0xd9   : > { %v292_v16 = vpop.f32.mrf.mxu0 }
  0xda   : > { %v520_v17 = vpop.f32.mrf.mxu1  ;;  %v366_v20 = vadd.f32 %v365_v14, %v292_v16 }
  0xdb   : > { %v645_v18 = vpop.f32.mrf.mxu0 }
  0xdc   : > { %v666_v19 = vpop.f32.mrf.mxu1 }
  0xdd   : > { %v442_v21 = vpop.f32.mrf.mxu0 }
  0xde   : > { %v446_v22 = vadd.f32 %v442_v21, %v366_v20 }
  0xdf   : > { %v659_v24 = vpop.f32.mrf.mxu0 }
  0xe0   : > { %v524_v25 = vadd.f32 %v520_v17, %v446_v22  ;;  %535 = sbr.rel (%p624_p4) target bundleno = 239 (0xef), region = 40 }
  0xe2   : > { %v530_v26 = vadd.f32 %v623_v23, %v524_v25 }
  0xe4   : > { %531 = vst [vmem:[%s209_s22] sm:$0xff] %v530_v26 }
  0xe5   : > { %v537_v28 = vld [vmem:[%s787_s3 + $0x1] sm:$0x7] }
  0xeb   : > { %v536_v27 = vld [vmem:[%s209_s22] sm:$0x7] }
  0xec   : > { %v538_v29 = vsub.f32 %v536_v27, %v537_v28 }
  0xee   : > { %539 = vst [vmem:[%s209_s22] sm:$0x7] %v538_v29 }
  0xef PF: > { %s14_s15 = sadd.s32 1, %s683_s15  }
  0xf0   : > { %p11_p5 = scmp.ge.s32.totalorder %s14_s15, 10  }
  0xf2   :  { %13 = sbr.rel (!%p11_p5) target bundleno = 1 (0x1), region = 76 }

</bundles_post_ra>
